<compile_context>
chip_gen: v6e
topology: v6e:2x2x1
jax: 0.10.0
libtpu: 0.0.40
codegen_flags: <defaults>
</compile_context>

<pallas_src>
import jax
import jax.numpy as jnp
from jax.experimental import pallas as pl
from jax.experimental.pallas import tpu as pltpu

_LANE = 128
_SUBLANE = 8
_MAX_BLOCK_BYTES = 2 * 1024 * 1024        # per pipelined buffer (double-buffered by Pallas)
_MAX_FUSED_SLAB_BYTES = 2 * 1024 * 1024   # per-sample (C, HW) slab limit for the fused path
_VMEM_LIMIT_BYTES = 32 * 1024 * 1024


# ---------------------------------------------------------------------------
# Fused single-pass kernel (small slabs): pool + matvec + hsigmoid + multiply
# ---------------------------------------------------------------------------
def _make_fused_kernel(inv_hw):
    def kernel(x_ref, wt_ref, b_ref, o_ref):
        # x_ref: (Bn, C, HW)  wt_ref: (C, C) transposed weight  b_ref: (1, C)
        x = x_ref[...]
        pooled = jnp.sum(x.astype(jnp.float32), axis=-1) * inv_hw            # (Bn, C)
        y = jnp.dot(pooled, wt_ref[...].astype(jnp.float32),
                    preferred_element_type=jnp.float32) + b_ref[...]          # (Bn, C)
        scale = (jnp.clip(y + 3.0, 0.0, 6.0) * (1.0 / 6.0)).astype(x.dtype)
        o_ref[...] = (x * scale[:, :, None]).astype(o_ref.dtype)
    return kernel


# ---------------------------------------------------------------------------
# Two-phase kernels
# ---------------------------------------------------------------------------
def _make_pool_kernel(hw, hwt):
    needs_mask = (hw % hwt) != 0
    inv_hw = 1.0 / hw

    def kernel(x_ref, o_ref):
        # x_ref: (Bn, C, hwt)   o_ref: (Bn, C, 1) f32 accumulator over grid axis 1
        j = pl.program_id(1)

        @pl.when(j == 0)
        def _():
            o_ref[...] = jnp.zeros_like(o_ref)

        x = x_ref[...].astype(jnp.float32)
        if needs_mask:  # mask the ragged HW tail (OOB reads are undefined)
            lane = jax.lax.broadcasted_iota(jnp.int32, (1, 1, hwt), 2)
            x = jnp.where(lane + j * hwt < hw, x, 0.0)
        o_ref[...] += jnp.sum(x, axis=-1, keepdims=True)

        @pl.when(j == pl.num_programs(1) - 1)
        def _():
            o_ref[...] *= inv_hw

    return kernel


def _scale_mul_kernel(x_ref, s_ref, o_ref):
    # x_ref: (Bn, Ct, HWt)   s_ref: (Bn, Ct, 1)   o_ref: (Bn, Ct, HWt)
    o_ref[...] = (x_ref[...] * s_ref[...]).astype(o_ref.dtype)


# ---------------------------------------------------------------------------
# Tile selection
# ---------------------------------------------------------------------------
def _choose_mul_tiles(n, c, hw, itemsize):
    budget = _MAX_BLOCK_BYTES // itemsize
    # lane (HW) tile: dense multiple of 128 when HW allows, up to 2048 lanes
    hwt = min((hw // _LANE) * _LANE, 2048) if hw >= _LANE else hw
    # sublane (channel) tile: multiple of 8, else full C
    if c % _SUBLANE == 0:
        ct = max(_SUBLANE, min(c, ((budget // hwt) // _SUBLANE) * _SUBLANE))
    else:
        ct = c
    # fold batch samples only when one block already covers a whole sample
    if ct == c and hwt == hw:
        bn = max(1, min(n, budget // max(1, c * hw)))
    else:
        bn = 1
    return bn, ct, hwt


def _choose_pool_tiles(n, c, hw, itemsize):
    budget = _MAX_BLOCK_BYTES // itemsize
    per_c = max(_LANE, ((budget // max(1, c)) // _LANE) * _LANE)
    hwt = min((hw // _LANE) * _LANE, per_c) if hw >= _LANE else hw
    if hwt == hw:
        bn = max(1, min(n, budget // max(1, c * hw)))
    else:
        bn = 1
    return bn, hwt


# ---------------------------------------------------------------------------
# Wrappers
# ---------------------------------------------------------------------------
def _ese_fused(x_flat, w_t, bias, n, c, hw):
    itemsize = jnp.dtype(x_flat.dtype).itemsize
    slab = c * hw * itemsize
    bn = max(1, min(n, _MAX_BLOCK_BYTES // max(1, slab)))
    bias2d = bias.reshape(1, c).astype(jnp.float32)
    return pl.pallas_call(
        _make_fused_kernel(1.0 / hw),
        out_shape=jax.ShapeDtypeStruct((n, c, hw), x_flat.dtype),
        grid_spec=pltpu.PrefetchScalarGridSpec(
            num_scalar_prefetch=0,
            grid=(pl.cdiv(n, bn),),
            in_specs=[
                pl.BlockSpec((bn, c, hw), lambda i: (i, 0, 0)),
                pl.BlockSpec((c, c), lambda i: (0, 0)),
                pl.BlockSpec((1, c), lambda i: (0, 0)),
            ],
            out_specs=pl.BlockSpec((bn, c, hw), lambda i: (i, 0, 0)),
        ),
        compiler_params=pltpu.CompilerParams(
            dimension_semantics=("parallel",),
            vmem_limit_bytes=_VMEM_LIMIT_BYTES,
        ),
    )(x_flat, w_t, bias2d)


def _ese_two_phase(x_flat, w_t, bias, n, c, hw):
    itemsize = jnp.dtype(x_flat.dtype).itemsize

    # ---- phase 1: per-(n, c) spatial mean (Pallas reduction over HW) ----
    bn_p, hwt_p = _choose_pool_tiles(n, c, hw, itemsize)
    pooled = pl.pallas_call(
        _make_pool_kernel(hw, hwt_p),
        out_shape=jax.ShapeDtypeStruct((n, c, 1), jnp.float32),
        grid_spec=pltpu.PrefetchScalarGridSpec(
            num_scalar_prefetch=0,
            grid=(pl.cdiv(n, bn_p), pl.cdiv(hw, hwt_p)),
            in_specs=[pl.BlockSpec((bn_p, c, hwt_p), lambda i, j: (i, 0, j))],
            out_specs=pl.BlockSpec((bn_p, c, 1), lambda i, j: (i, 0, 0)),
        ),
        compiler_params=pltpu.CompilerParams(
            dimension_semantics=("parallel", "arbitrary"),
            vmem_limit_bytes=_VMEM_LIMIT_BYTES,
        ),
    )(x_flat)

    # ---- scale: tiny (N,C)@(C,C) matvec + hard-sigmoid in plain XLA ----
    # (keeps the (C,C) weight out of the big multiply kernel's VMEM footprint)
    y = pooled[:, :, 0] @ w_t.astype(jnp.float32) + bias.astype(jnp.float32)[None, :]
    scale = (jnp.clip(y + 3.0, 0.0, 6.0) * (1.0 / 6.0)).astype(x_flat.dtype)
    scale = scale.reshape(n, c, 1)

    # ---- phase 2: broadcast multiply, tiled over (batch, C, HW) ----
    bn, ct, hwt = _choose_mul_tiles(n, c, hw, itemsize)
    return pl.pallas_call(
        _scale_mul_kernel,
        out_shape=jax.ShapeDtypeStruct((n, c, hw), x_flat.dtype),
        grid_spec=pltpu.PrefetchScalarGridSpec(
            num_scalar_prefetch=0,
            grid=(pl.cdiv(n, bn), pl.cdiv(c, ct), pl.cdiv(hw, hwt)),
            in_specs=[
                pl.BlockSpec((bn, ct, hwt), lambda i, j, k: (i, j, k)),
                pl.BlockSpec((bn, ct, 1), lambda i, j, k: (i, j, 0)),
            ],
            out_specs=pl.BlockSpec((bn, ct, hwt), lambda i, j, k: (i, j, k)),
        ),
        compiler_params=pltpu.CompilerParams(
            dimension_semantics=("parallel", "parallel", "parallel"),
            vmem_limit_bytes=_VMEM_LIMIT_BYTES,
        ),
    )(x_flat, scale)


def ese_module(x, weight, bias, *, path=None):
    """eSEModule forward.

    Args:
      x:      (N, C, H, W) activations (NCHW, same as the PyTorch module).
      weight: (C, C)  -- Conv2d(C, C, 1) weight squeezed from (C, C, 1, 1).
      bias:   (C,)    -- Conv2d bias.
      path:   None (auto), "fused" or "two_phase".
    Returns:
      (N, C, H, W), same dtype as x.
    """
    n, c, h, w = x.shape
    hw = h * w
    x_flat = x.reshape(n, c, hw)
    w_t = weight.T  # (C_in, C_out) so that pooled @ w_t == W @ pooled per sample

    if path is None:
        slab = c * hw * jnp.dtype(x.dtype).itemsize
        path = "fused" if slab <= _MAX_FUSED_SLAB_BYTES else "two_phase"

    if path == "fused":
        out_flat = _ese_fused(x_flat, w_t, bias, n, c, hw)
    elif path == "two_phase":
        out_flat = _ese_two_phase(x_flat, w_t, bias, n, c, hw)
    else:
        raise ValueError(f"unknown path: {path}")

    return out_flat.reshape(n, c, h, w)


def ese_reference(x, weight, bias):
    # pure-JAX reference for correctness check
    pooled = jnp.mean(x, axis=(2, 3), keepdims=True)                    # (N,C,1,1)
    y = jnp.einsum("oc,ncij->noij", weight, pooled) + bias[None, :, None, None]
    scale = jnp.clip(y + 3.0, 0.0, 6.0) / 6.0
    return x * scale


if __name__ == "__main__":
    key = jax.random.PRNGKey(0)

    # shape 1: the basic small case.  shape 2: HW not a multiple of 128 and
    # larger than one lane group -> exercises the masked-reduction path and
    # ragged-tail multiply blocks.
    shapes = [(2, 4, 16, 16), (2, 8, 10, 20)]

    for (N, C, H, W) in shapes:
        key, kx, kw, kb = jax.random.split(key, 4)
        x = jax.random.normal(kx, (N, C, H, W), dtype=jnp.float32)
        weight = jax.random.normal(kw, (C, C), dtype=jnp.float32) * 0.5
        bias = jax.random.normal(kb, (C,), dtype=jnp.float32) * 0.1

        ref = ese_reference(x, weight, bias)

        out_fused = jax.block_until_ready(ese_module(x, weight, bias, path="fused"))
        out_two = jax.block_until_ready(ese_module(x, weight, bias, path="two_phase"))

        assert out_fused.shape == (N, C, H, W)
        assert out_two.shape == (N, C, H, W)
        assert jnp.allclose(out_fused, ref, atol=1e-5, rtol=1e-5), "fused path mismatch"
        assert jnp.allclose(out_two, ref, atol=1e-5, rtol=1e-5), "two-phase path mismatch"

    print("KERNEL_OK")
</pallas_src>

<mosaic_0001>
module attributes {stable_mosaic.version = 11 : i64} {
  func.func @kernel(%arg0: i32, %arg1: memref<2x4x256xf32, #tpu.memory_space<vmem>>, %arg2: memref<4x4xf32, #tpu.memory_space<vmem>>, %arg3: memref<1x4xf32, #tpu.memory_space<vmem>>, %arg4: memref<2x4x256xf32, #tpu.memory_space<vmem>>) attributes {dimension_semantics = [#tpu.dimension_semantics<parallel>], iteration_bounds = array<i64: 1>, scalar_prefetch = 0 : i64, scratch_operands = 0 : i64, tpu.core_type = #tpu.core_type<tc>, window_params = [{transform_indices = @transform_0, window_bounds = array<i64: 2, 4, 256>}, {pipeline_mode = #tpu.pipeline_mode<synchronous>, transform_indices = @transform_1, window_bounds = array<i64: 4, 4>}, {pipeline_mode = #tpu.pipeline_mode<synchronous>, transform_indices = @transform_2, window_bounds = array<i64: 1, 4>}, {transform_indices = @transform_3, window_bounds = array<i64: 2, 4, 256>}]} {
    %c0 = arith.constant 0 : index
    %c0_0 = arith.constant 0 : index
    %c0_1 = arith.constant 0 : index
    %0 = vector.load %arg1[%c0, %c0_0, %c0_1] : memref<2x4x256xf32, #tpu.memory_space<vmem>>, vector<2x4x256xf32>
    %cst = arith.constant dense<0.000000e+00> : vector<2x4xf32>
    %1 = vector.multi_reduction <add>, %0, %cst [2] : vector<2x4x256xf32> to vector<2x4xf32>
    %cst_2 = arith.constant 3.906250e-03 : f32
    %2 = vector.broadcast %cst_2 : f32 to vector<2x4xf32>
    %3 = arith.mulf %1, %2 : vector<2x4xf32>
    %c0_3 = arith.constant 0 : index
    %c0_4 = arith.constant 0 : index
    %4 = vector.load %arg2[%c0_3, %c0_4] : memref<4x4xf32, #tpu.memory_space<vmem>>, vector<4x4xf32>
    %cst_5 = arith.constant dense<0.000000e+00> : vector<2x4xf32>
    %5 = tpu.matmul %3, %4, %cst_5 {dimension_numbers = #tpu.dot_dimension_numbers<[1], [0], [0], [1], [0, 0, 1, 1], [], []>} : vector<2x4xf32>, vector<4x4xf32>, vector<2x4xf32> -> vector<2x4xf32>
    %c0_6 = arith.constant 0 : index
    %c0_7 = arith.constant 0 : index
    %6 = vector.load %arg3[%c0_6, %c0_7] : memref<1x4xf32, #tpu.memory_space<vmem>>, vector<1x4xf32>
    %7 = vector.broadcast %6 : vector<1x4xf32> to vector<2x4xf32>
    %8 = arith.addf %5, %7 : vector<2x4xf32>
    %cst_8 = arith.constant 3.000000e+00 : f32
    %9 = vector.broadcast %cst_8 : f32 to vector<2x4xf32>
    %10 = arith.addf %8, %9 : vector<2x4xf32>
    %cst_9 = arith.constant 0.000000e+00 : f32
    %cst_10 = arith.constant 6.000000e+00 : f32
    %11 = vector.broadcast %cst_9 : f32 to vector<2x4xf32>
    %12 = arith.maximumf %11, %10 : vector<2x4xf32>
    %13 = vector.broadcast %cst_10 : f32 to vector<2x4xf32>
    %14 = arith.minimumf %13, %12 : vector<2x4xf32>
    %cst_11 = arith.constant 0.166666672 : f32
    %15 = vector.broadcast %cst_11 : f32 to vector<2x4xf32>
    %16 = arith.mulf %14, %15 : vector<2x4xf32>
    %17 = vector.shape_cast %16 : vector<2x4xf32> to vector<2x4x1xf32>
    %18 = vector.broadcast %17 : vector<2x4x1xf32> to vector<2x4x256xf32>
    %19 = arith.mulf %0, %18 : vector<2x4x256xf32>
    %c0_12 = arith.constant 0 : index
    %c0_13 = arith.constant 0 : index
    %c0_14 = arith.constant 0 : index
    %20 = vector.load %arg4[%c0_12, %c0_13, %c0_14] : memref<2x4x256xf32, #tpu.memory_space<vmem>>, vector<2x4x256xf32>
    tpu.vector_store %arg4[%c0_12, %c0_13, %c0_14], %19 {strides = array<i32>} : memref<2x4x256xf32, #tpu.memory_space<vmem>>, vector<2x4x256xf32>,
    return
  }
  func.func @transform_0(%arg0: i32) -> (i32, i32, i32) {
    %c0_i32 = arith.constant 0 : i32
    %c0_i32_0 = arith.constant 0 : i32
    %c0_i32_1 = arith.constant 0 : i32
    return %arg0, %c0_i32, %c0_i32_0 : i32, i32, i32
  }
  func.func @transform_1(%arg0: i32) -> (i32, i32) {
    %c0_i32 = arith.constant 0 : i32
    %c0_i32_0 = arith.constant 0 : i32
    %c0_i32_1 = arith.constant 0 : i32
    return %c0_i32, %c0_i32_0 : i32, i32
  }
  func.func @transform_2(%arg0: i32) -> (i32, i32) {
    %c0_i32 = arith.constant 0 : i32
    %c0_i32_0 = arith.constant 0 : i32
    %c0_i32_1 = arith.constant 0 : i32
    return %c0_i32, %c0_i32_0 : i32, i32
  }
  func.func @transform_3(%arg0: i32) -> (i32, i32, i32) {
    %c0_i32 = arith.constant 0 : i32
    %c0_i32_0 = arith.constant 0 : i32
    %c0_i32_1 = arith.constant 0 : i32
    return %arg0, %c0_i32, %c0_i32_0 : i32, i32, i32
  }
}

</mosaic_0001>

<bundles_post_ra>
// kernel: tpu_custom_call.1
= control target key start
LH: loop header
LB: loop body
LE: loop exit
PB: predicated region body
PF: predicated region fallthrough
CT: control target
= control target key end

     0   :  { %8 = vsyncpa [#allocation3], 0  ;;  %s355_s0 = inlined_call_operand.hbm [shape: f32[2,4,256], index: 0, kind: input, shape index: {}]   ;;  %s356_s1 = inlined_call_operand.hbm [shape: f32[4,4], index: 1, kind: input, shape index: {}]   ;;  %s357_s2 = inlined_call_operand.vmem [shape: f32[1,4], index: 2, kind: input, shape index: {}]   ;;  %s358_s3 = inlined_call_operand.hbm [shape: f32[2,4,256], index: 3, kind: output, shape index: {}]  }
   0x1   :  { %9 = vsyncpa [#allocation6], 0 }
   0x2   :  { %10 = vsyncpa [#allocation4], 0  ;;  %s304_s12 = smov [#allocation2]  }
   0x3   :  { %s16_s13 = sshll.u32 %s304_s12, 4  ;;  %s17_s13 = int_to_ptr.vmem [resolvable:$true] %s16_s13 }
   0x4   :  { %s246_s14 = scalar_lea.vmem %s17_s13, 256  ;;  %p251_p1 = scmp.lt.s32.totalorder %s17_s13, %s17_s13 }
   0x5   :  { %p247_p0 = scmp.ne.s32.totalorder %s17_s13, %s246_s14  ;;  %p252_p2 = scmp.lt.s32.totalorder %s246_s14, %s246_s14 }
   0x7   :  { %p253_p3 = por %p252_p2, %p251_p1 }
   0x9   :  { %p254_p4 = pnand %p253_p3, %p247_p0 }
   0xb   :  { %257 = shalt.err (!%p254_p4)
}
   0xc   :  { %s305_s15 = smov 128   ;;  %s306_s16 = smov 8  }
   0xd   :  { %22 = dma.hbm_to_vmem [thread:$0]  %s355_s0, 256, %s17_s13, [#allocation3], %s305_s15, %s305_s15, %s306_s16  }
   0xe   :  { %s307_s19 = smov [#allocation5]  }
   0xf   :  { %s29_s20 = sshll.u32 %s307_s19, 4  ;;  %s30_s20 = int_to_ptr.vmem [resolvable:$true] %s29_s20 }
  0x10   :  { %s266_s21 = scalar_lea.vmem %s30_s20, 64  ;;  %p271_p6 = scmp.lt.s32.totalorder %s30_s20, %s30_s20 }
  0x11   :  { %p267_p5 = scmp.ne.s32.totalorder %s30_s20, %s266_s21  ;;  %p272_p7 = scmp.lt.s32.totalorder %s266_s21, %s266_s21 }
  0x13   :  { %p273_p8 = por %p272_p7, %p271_p6 }
  0x15   :  { %p274_p9 = pnand %p273_p8, %p267_p5 }
  0x17   :  { %277 = shalt.err (!%p274_p9)
}
  0x18   :  { %32 = dma.hbm_to_vmem [thread:$0]  %s356_s1, 64, %s30_s20, [#allocation6]  }
  0x19   :  { %298 = dma.done.wait [#allocation3], 256  }
  0x1a   :  { %299 = vsyncadd [#allocation3], 4294967040 }
  0x1b   :  { %300 = dma.done.wait [#allocation6], 64  }
  0x1c   :  { %301 = vsyncadd [#allocation6], 4294967232  ;;  %vm49_vm0 = vcmask 1043456   ;;  %v41_v0 = vld [vmem:[#allocation2] sm:$0xff]  ;;  %v42_v1 = vld [vmem:[#allocation2 + $0x8] sm:$0xff]  ;;  %v308_v11 = vmov 0.0   ;;  %v72_v12 = vlaneseq }
  0x1d   :  { %v45_v2 = vcombine.high %v41_v0, %v41_v0  ;;  %v50_v3 = vsel %vm49_vm0, %v41_v0, 0.0  ;;  %v46_v4 = vcombine.high %v42_v1, %v42_v1  ;;  %v55_v6 = vsel %vm49_vm0, %v42_v1, 0.0  ;;  %v62_v10 = vld [vmem:[#allocation5] sm:$0xf]  ;;  %223 = vmatprep.subr.mxu0 %v308_v11  ;;  %v218_v23 = vld [vmem:[%s357_s2] ss:$0 sm:$0xff] }
  0x1e   :  { %vm309_vm1 = vmmov 0   ;;  %224 = vmatpush3.msk.msra.mxu0 %vm49_vm0, %v62_v10  ;;  %v73_v13 = vand.u32 127, %v72_v12  ;;  %v75_v14 = vshrl.u32 %v72_v12, 7  ;;  %vm82_vm2 = vcmask 1041409   ;;  %s311_s2 = smov [#allocation7]  }
  0x1f   :  { %v51_v5 = vsel %vm49_vm0, %v45_v2, 0.0  ;;  %v56_v7 = vsel %vm49_vm0, %v46_v4, 0.0  ;;  %225 = vmatprep.mubr.msk.f32.mxu0 %vm309_vm1, %v308_v11  ;;  %vm84_vm3 = vcmask 31744   ;;  %v310_v35 = vmov 839922192   ;;  %s205_s24 = sshll.u32 %s311_s2, 4  ;;  %s206_s24 = int_to_ptr.vmem [resolvable:$true] %s205_s24 }
  0x20   :  { %v52_v8 = vadd.f32 %v51_v5, %v50_v3  ;;  %v57_v9 = vadd.f32 %v56_v7, %v55_v6  ;;  %v76_v16 = vsub.s32 %v73_v13, %v75_v14  ;;  %v166_v30 = vsub.s32 0, %v75_v14  ;;  %s278_s25 = scalar_lea.vmem %s206_s24, 256  ;;  %p283_p11 = scmp.lt.s32.totalorder %s206_s24, %s206_s24 }
  0x21   :  { %v173_v33 = vsub.s32 1, %v75_v14  ;;  %v181_v36 = vunpack.c.l.s4 %v310_v35  ;;  %p279_p10 = scmp.ne.s32.totalorder %s206_s24, %s278_s25  ;;  %p284_p12 = scmp.lt.s32.totalorder %s278_s25, %s278_s25 }
  0x22   :  { %53 = vadd.xlane.f32.xlu0 %v52_v8 }
  0x23   :  { %v182_v37 = vunpack.c.0.s8 %v181_v36  ;;  %p285_p13 = por %p284_p12, %p283_p11 }
  0x25   :  { %v185_v38 = vsub.s32 %v182_v37, %v75_v14  ;;  %p286_p0 = pnand %p285_p13, %p279_p10 }
  0x26   :  { %58 = vadd.xlane.f32.xlu0 %v57_v9 }
  0xab   :  { %v54_v15 = vpop.xlane.xlu0 %53 }
  0xac   :  { %v60_v17 = vmul.f32 0.00390625, %v54_v15 }
  0xae   :  { %v77_v20 = vrot.slane %v60_v17, %v76_v16 }
  0xaf   :  { %v59_v18 = vpop.xlane.xlu0 %58 }
  0xb0   :  { %v61_v19 = vmul.f32 0.00390625, %v59_v18 }
  0xb2   :  { %v81_v21 = vrot.slane %v61_v19, %v76_v16 }
  0xb4   :  { %v83_v22 = vsel %vm82_vm2, %v81_v21, %v77_v20 }
  0xb5   :  { %226 = vmatmul.mubr.msk.f32.vlgmr.msra.gmra.mxu0 %vm84_vm3, %v83_v22 }
 0x175   :  { %v156_v24 = vpop.f32.mrf.mxu0 }
 0x176   :  { %v157_v25 = vadd.f32 %v218_v23, %v156_v24 }
 0x177   :  { %v227_v26 = vpop.f32.mrf.mxu0 }
 0x178   :  { %v160_v27 = vadd.f32 3.0, %v157_v25 }
 0x17a   :  { %v161_v28 = vmax.f32 %v160_v27, 0.0 }
 0x17c   :  { %v162_v29 = vmin.f32 %v161_v28, 6.0 }
 0x17e   :  { %v163_v31 = vmul.f32 0.16666667, %v162_v29 }
 0x180   :  { %v167_v32 = vrot.slane %v163_v31, %v166_v30  ;;  %v174_v34 = vrot.slane %v163_v31, %v173_v33 }
 0x182   :  { %169 = vbcast.lane.b32.xlu1 %v167_v32, 256 }
 0x186   :  { %176 = vbcast.lane.b32.xlu1 %v174_v34, 256 }
 0x1f4   :  { %v170_v39 = vpop.permute.xlu1 %169 }
 0x1f5   :  { %v186_v40 = vrot.slane %v170_v39, %v185_v38 }
 0x1f7   :  { %v196_v41 = vmul.f32 %v186_v40, %v41_v0 }
 0x1f8   :  { %v177_v42 = vpop.permute.xlu1 %176 }
 0x1f9   :  { %198 = vst [vmem:[#allocation7] sm:$0xff] %v196_v41  ;;  %v193_v43 = vrot.slane %v177_v42, %v185_v38 }
 0x1fb   :  { %v197_v44 = vmul.f32 %v193_v43, %v42_v1 }
 0x1fd   :  { %199 = vst [vmem:[#allocation7 + $0x8] sm:$0xff] %v197_v44 }
 0x1fe   :  { %289 = shalt.err (!%p286_p0)
}
 0x1ff   :  { %211 = dma.vmem_to_hbm [thread:$0]  %s206_s24, 256, %s358_s3, [#allocation4], %s305_s15, %s305_s15, %s306_s16  }
 0x200   :  { %302 = dma.done.wait [#allocation4], 256  }
 0x201   :  { %303 = vsyncadd [#allocation4], 4294967040 }
 0x202   :  { %215 = vsyncpa [#allocation3], 1 }
 0x203   :  { %216 = vsyncpa [#allocation6], 1 }
 0x204   :  { %217 = vsyncpa [#allocation4], 1 }

</bundles_post_ra>
